<compile_context>
chip_gen: v5e
topology: v5e:2x2
jax: 0.10.0
libtpu: 0.0.40
codegen_flags: <defaults>
</compile_context>

<pallas_src>
import math

import jax
import jax.numpy as jnp
from jax import lax
from jax.experimental import pallas as pl
from jax.experimental.pallas import tpu as pltpu

VMEM_SPEC = pl.BlockSpec(memory_space=pltpu.MemorySpace.VMEM)


def _vmem_specs(n):
    return [pl.BlockSpec(memory_space=pltpu.MemorySpace.VMEM) for _ in range(n)]


# ---------------------------------------------------------------------------
# Fused forward kernel
# ---------------------------------------------------------------------------
def gnp_fused_kernel(x_ref, adj_ref, qemb_ref, pool_ref,
                     gw0_ref, gw1_ref, gw2_ref, gvec_ref,
                     fw1_ref, fw2_ref, fb_ref,
                     saw_ref, sab_ref, caw_ref, cab_ref,
                     out_ref):
    f32 = jnp.float32
    bf16 = jnp.bfloat16
    adj = adj_ref[...]                                     # [N, N] f32 mask

    # -------- GAT: 3 x (GATConv single head + outer ReLU) --------
    h = x_ref[...]                                         # bf16 [N, Din]
    for layer, w_ref in enumerate((gw0_ref, gw1_ref, gw2_ref)):
        vecs = gvec_ref[layer]                             # f32 [3, H]
        a_src = vecs[0:1, :]                               # [1, H]
        a_dst = vecs[1:2, :]                               # [1, H]
        bias = vecs[2:3, :]                                # [1, H]

        xp = jnp.dot(h, w_ref[...], preferred_element_type=f32)       # [N, H]
        xp_b = xp.astype(bf16)

        # e[i, j] = LeakyReLU(a_dst . xp_i + a_src . xp_j)
        d_col = jnp.sum(xp * a_dst, axis=-1, keepdims=True)           # [N, 1] reduce
        s_row = lax.dot_general(a_src.astype(bf16), xp_b,             # [1, N], no xp.T
                                (((1,), (1,)), ((), ())),
                                preferred_element_type=f32)
        e = d_col + s_row                                              # [N, N]
        e = jnp.where(e > 0, e, 0.2 * e)                               # LeakyReLU(0.2)
        e = jnp.where(adj > 0, e, -1e30)                               # single mask pass
        e = e - jnp.max(e, axis=-1, keepdims=True)
        p = jnp.exp(e)                                                 # masked -> exact 0
        alpha = p * pl.reciprocal(jnp.sum(p, axis=-1, keepdims=True), approx=True)

        agg = jnp.dot(alpha.astype(bf16), xp_b, preferred_element_type=f32) + bias
        h = jnp.maximum(agg, 0.0).astype(bf16)                         # outer F.relu
    h1 = h                                                             # bf16 [N, H]

    # -------- FFN(q_emb): Linear(2H,2H) -> ReLU -> Linear(2H,H) --------
    hdim = fw2_ref.shape[1]
    fb = fb_ref[...]                                       # f32 [2, 2H]
    b1 = fb[0:1, :]                                        # [1, 2H]
    b2 = fb[1:2, 0:hdim]                                   # [1, H]
    t = jnp.dot(qemb_ref[...], fw1_ref[...], preferred_element_type=f32) + b1
    t = jnp.maximum(t, 0.0).astype(bf16)
    t = (jnp.dot(t, fw2_ref[...], preferred_element_type=f32) + b2).astype(bf16)

    # -------- single-head MultiheadAttention (batch_first, eval) --------
    def mha(q_in, k_in, v_in, w_ref, b_ref):
        q = jnp.dot(q_in, w_ref[0], preferred_element_type=f32) + b_ref[0:1, :]
        k = jnp.dot(k_in, w_ref[1], preferred_element_type=f32) + b_ref[1:2, :]
        v = jnp.dot(v_in, w_ref[2], preferred_element_type=f32) + b_ref[2:3, :]
        scale = 1.0 / math.sqrt(q.shape[-1])
        s = lax.dot_general(q.astype(bf16), k.astype(bf16),            # [Lq, Lk], no k.T
                            (((1,), (1,)), ((), ())),
                            preferred_element_type=f32) * scale
        s = s - jnp.max(s, axis=-1, keepdims=True)
        p = jnp.exp(s)
        p = p * pl.reciprocal(jnp.sum(p, axis=-1, keepdims=True), approx=True)
        a = jnp.dot(p.astype(bf16), v.astype(bf16), preferred_element_type=f32)
        return jnp.dot(a.astype(bf16), w_ref[3], preferred_element_type=f32) + b_ref[3:4, :]

    h2 = mha(h1, h1, h1, saw_ref, sab_ref).astype(bf16)    # self-attn(h1, h1, h1)
    h3 = mha(h2, t, t, caw_ref, cab_ref).astype(bf16)      # cross-attn(h2, t, t)

    # -------- global_mean_pool: out = P @ h3 --------
    out_ref[...] = jnp.dot(pool_ref[...], h3, preferred_element_type=f32)


# ---------------------------------------------------------------------------
# Glue (plain JAX): adjacency / pooling matrices, parameter init, forward
# ---------------------------------------------------------------------------
def build_adj(edge_index, num_nodes):
    src, dst = edge_index[0], edge_index[1]
    adj = jnp.zeros((num_nodes, num_nodes), jnp.float32)
    adj = adj.at[dst, src].set(1.0)                       # message j (src) -> i (dst)
    adj = jnp.maximum(adj, jnp.eye(num_nodes, dtype=jnp.float32))  # GATConv add_self_loops
    return adj


def build_pool_matrix(batch, num_graphs):
    onehot = (batch[None, :] == jnp.arange(num_graphs)[:, None]).astype(jnp.float32)
    counts = jnp.maximum(jnp.sum(onehot, axis=1, keepdims=True), 1.0)
    return onehot / counts


def init_params(key, input_dim, hidden_dim):
    keys = iter(jax.random.split(key, 32))

    def dense(fan_in, fan_out):
        w = jax.random.normal(next(keys), (fan_in, fan_out), jnp.float32) / math.sqrt(fan_in)
        return w.astype(jnp.bfloat16)

    # GAT: 3 layers.  Matmul weights bf16; [a_src, a_dst, bias] packed f32.
    gat_w0 = dense(input_dim, hidden_dim)
    gat_w1 = dense(hidden_dim, hidden_dim)
    gat_w2 = dense(hidden_dim, hidden_dim)
    gat_vecs = jnp.stack([
        jnp.stack([
            0.1 * jax.random.normal(next(keys), (hidden_dim,), jnp.float32),  # a_src
            0.1 * jax.random.normal(next(keys), (hidden_dim,), jnp.float32),  # a_dst
            jnp.zeros((hidden_dim,), jnp.float32),                            # bias
        ]) for _ in range(3)
    ])                                                     # [3, 3, H] f32

    # FFN
    ffn_w1 = dense(2 * hidden_dim, 2 * hidden_dim)
    ffn_w2 = dense(2 * hidden_dim, hidden_dim)
    ffn_b = jnp.zeros((2, 2 * hidden_dim), jnp.float32)    # row0=b1, row1[:H]=b2

    # Single-head MHA: stacked [wq, wk, wv, wo] bf16 and [bq, bk, bv, bo] f32.
    def mha_params():
        w = jnp.stack([dense(hidden_dim, hidden_dim) for _ in range(4)])   # [4, E, E]
        b = jnp.zeros((4, hidden_dim), jnp.float32)
        return w, b

    sa_w, sa_b = mha_params()
    ca_w, ca_b = mha_params()

    # TODO(synk): LinkPrediction head only feeds link_pred_loss (not forward); omitted.
    return dict(gat_w0=gat_w0, gat_w1=gat_w1, gat_w2=gat_w2, gat_vecs=gat_vecs,
                ffn_w1=ffn_w1, ffn_w2=ffn_w2, ffn_b=ffn_b,
                sa_w=sa_w, sa_b=sa_b, ca_w=ca_w, ca_b=ca_b)


def gnp_forward(params, q_emb, x, edge_index, batch, num_graphs):
    n = x.shape[0]
    hidden_dim = params["gat_w2"].shape[1]
    adj = build_adj(edge_index, n)
    pool_mat = build_pool_matrix(batch, num_graphs).astype(jnp.bfloat16)

    return pl.pallas_call(
        gnp_fused_kernel,
        out_shape=jax.ShapeDtypeStruct((num_graphs, hidden_dim), jnp.float32),
        in_specs=_vmem_specs(15),
        out_specs=VMEM_SPEC,
    )(x.astype(jnp.bfloat16), adj, q_emb.astype(jnp.bfloat16), pool_mat,
      params["gat_w0"], params["gat_w1"], params["gat_w2"], params["gat_vecs"],
      params["ffn_w1"], params["ffn_w2"], params["ffn_b"],
      params["sa_w"], params["sa_b"], params["ca_w"], params["ca_b"])


if __name__ == "__main__":
    INPUT_DIM = 16
    HIDDEN_DIM = 32
    NUM_GRAPHS = 2
    NODES_PER_GRAPH = 8
    N = NUM_GRAPHS * NODES_PER_GRAPH      # 16 nodes
    SEQ = 8                               # q_emb sequence length

    key = jax.random.PRNGKey(0)
    k_params, k_x, k_q = jax.random.split(key, 3)

    params = init_params(k_params, INPUT_DIM, HIDDEN_DIM)

    x = jax.random.normal(k_x, (N, INPUT_DIM), jnp.float32)
    q_emb = jax.random.normal(k_q, (SEQ, 2 * HIDDEN_DIM), jnp.float32)

    # Deterministic duplicate-free, self-loop-free edges within each graph:
    # i -> i+1 and i -> i+2 inside every block of 8 nodes.
    src, dst = [], []
    for g in range(NUM_GRAPHS):
        base = g * NODES_PER_GRAPH
        for i in range(NODES_PER_GRAPH - 1):
            src.append(base + i); dst.append(base + i + 1)
        for i in range(NODES_PER_GRAPH - 2):
            src.append(base + i); dst.append(base + i + 2)
    edge_index = jnp.array([src, dst], dtype=jnp.int32)      # [2, 26]
    batch = jnp.repeat(jnp.arange(NUM_GRAPHS, dtype=jnp.int32), NODES_PER_GRAPH)  # [16]

    out = gnp_forward(params, q_emb, x, edge_index, batch, NUM_GRAPHS)
    out = jax.block_until_ready(out)
    assert out.shape == (NUM_GRAPHS, HIDDEN_DIM)
    assert bool(jnp.all(jnp.isfinite(out)))
    print("KERNEL_OK")
</pallas_src>

<mosaic_0001>
module attributes {stable_mosaic.version = 11 : i64} {
  func.func @gnp_fused_kernel(%arg0: memref<16x16xbf16, #tpu.memory_space<vmem>>, %arg1: memref<16x16xf32, #tpu.memory_space<vmem>>, %arg2: memref<8x64xbf16, #tpu.memory_space<vmem>>, %arg3: memref<2x16xbf16, #tpu.memory_space<vmem>>, %arg4: memref<16x32xbf16, #tpu.memory_space<vmem>>, %arg5: memref<32x32xbf16, #tpu.memory_space<vmem>>, %arg6: memref<32x32xbf16, #tpu.memory_space<vmem>>, %arg7: memref<3x3x32xf32, #tpu.memory_space<vmem>>, %arg8: memref<64x64xbf16, #tpu.memory_space<vmem>>, %arg9: memref<64x32xbf16, #tpu.memory_space<vmem>>, %arg10: memref<2x64xf32, #tpu.memory_space<vmem>>, %arg11: memref<4x32x32xbf16, #tpu.memory_space<vmem>>, %arg12: memref<4x32xf32, #tpu.memory_space<vmem>>, %arg13: memref<4x32x32xbf16, #tpu.memory_space<vmem>>, %arg14: memref<4x32xf32, #tpu.memory_space<vmem>>, %arg15: memref<2x32xf32, #tpu.memory_space<vmem>>) attributes {dimension_semantics = [], scalar_prefetch = 0 : i64, scratch_operands = 0 : i64, tpu.core_type = #tpu.core_type<tc>} {
    %c0 = arith.constant 0 : index
    %c0_0 = arith.constant 0 : index
    %0 = vector.load %arg1[%c0, %c0_0] : memref<16x16xf32, #tpu.memory_space<vmem>>, vector<16x16xf32>
    %c0_1 = arith.constant 0 : index
    %c0_2 = arith.constant 0 : index
    %1 = vector.load %arg0[%c0_1, %c0_2] : memref<16x16xbf16, #tpu.memory_space<vmem>>, vector<16x16xbf16>
    %c0_3 = arith.constant 0 : index
    %c0_4 = arith.constant 0 : index
    %c0_5 = arith.constant 0 : index
    %2 = vector.load %arg7[%c0_3, %c0_4, %c0_5] : memref<3x3x32xf32, #tpu.memory_space<vmem>>, vector<1x3x32xf32>
    %3 = vector.shape_cast %2 : vector<1x3x32xf32> to vector<3x32xf32>
    %4 = vector.extract_strided_slice %3 {offsets = [0, 0], sizes = [1, 32], strides = [1, 1]} : vector<3x32xf32> to vector<1x32xf32>
    %5 = vector.extract_strided_slice %3 {offsets = [1, 0], sizes = [1, 32], strides = [1, 1]} : vector<3x32xf32> to vector<1x32xf32>
    %6 = vector.extract_strided_slice %3 {offsets = [2, 0], sizes = [1, 32], strides = [1, 1]} : vector<3x32xf32> to vector<1x32xf32>
    %c0_6 = arith.constant 0 : index
    %c0_7 = arith.constant 0 : index
    %7 = vector.load %arg4[%c0_6, %c0_7] : memref<16x32xbf16, #tpu.memory_space<vmem>>, vector<16x32xbf16>
    %cst = arith.constant dense<0.000000e+00> : vector<16x32xf32>
    %8 = tpu.matmul %1, %7, %cst {dimension_numbers = #tpu.dot_dimension_numbers<[1], [0], [0], [1], [0, 0, 1, 1], [], []>} : vector<16x16xbf16>, vector<16x32xbf16>, vector<16x32xf32> -> vector<16x32xf32>
    %9 = arith.truncf %8 : vector<16x32xf32> to vector<16x32xbf16>
    %10 = vector.broadcast %5 : vector<1x32xf32> to vector<16x32xf32>
    %11 = arith.mulf %8, %10 : vector<16x32xf32>
    %cst_8 = arith.constant dense<0.000000e+00> : vector<16xf32>
    %12 = vector.multi_reduction <add>, %11, %cst_8 [1] : vector<16x32xf32> to vector<16xf32>
    %13 = vector.shape_cast %12 : vector<16xf32> to vector<16x1xf32>
    %14 = arith.truncf %4 : vector<1x32xf32> to vector<1x32xbf16>
    %cst_9 = arith.constant dense<0.000000e+00> : vector<1x16xf32>
    %15 = tpu.matmul %14, %9, %cst_9 {dimension_numbers = #tpu.dot_dimension_numbers<[1], [1], [0], [0], [0, 0, 1, 0], [], []>} : vector<1x32xbf16>, vector<16x32xbf16>, vector<1x16xf32> -> vector<1x16xf32>
    %16 = vector.broadcast %13 : vector<16x1xf32> to vector<16x16xf32>
    %17 = vector.broadcast %15 : vector<1x16xf32> to vector<16x16xf32>
    %18 = arith.addf %16, %17 : vector<16x16xf32>
    %cst_10 = arith.constant 0.000000e+00 : f32
    %19 = vector.broadcast %cst_10 : f32 to vector<16x16xf32>
    %20 = arith.cmpf ogt, %18, %19 : vector<16x16xf32>
    %cst_11 = arith.constant 2.000000e-01 : f32
    %21 = vector.broadcast %cst_11 : f32 to vector<16x16xf32>
    %22 = arith.mulf %21, %18 : vector<16x16xf32>
    %23 = arith.select %20, %18, %22 : vector<16x16xi1>, vector<16x16xf32>
    %cst_12 = arith.constant 0.000000e+00 : f32
    %24 = vector.broadcast %cst_12 : f32 to vector<16x16xf32>
    %25 = arith.cmpf ogt, %0, %24 : vector<16x16xf32>
    %cst_13 = arith.constant -1.000000e+30 : f32
    %26 = vector.broadcast %cst_13 : f32 to vector<16x16xf32>
    %27 = arith.select %25, %23, %26 : vector<16x16xi1>, vector<16x16xf32>
    %cst_14 = arith.constant dense<0xFF800000> : vector<16xf32>
    %28 = vector.multi_reduction <maximumf>, %27, %cst_14 [1] : vector<16x16xf32> to vector<16xf32>
    %29 = vector.shape_cast %28 : vector<16xf32> to vector<16x1xf32>
    %30 = vector.broadcast %29 : vector<16x1xf32> to vector<16x16xf32>
    %31 = arith.subf %27, %30 : vector<16x16xf32>
    %32 = math.exp %31 : vector<16x16xf32>
    %cst_15 = arith.constant dense<0.000000e+00> : vector<16xf32>
    %33 = vector.multi_reduction <add>, %32, %cst_15 [1] : vector<16x16xf32> to vector<16xf32>
    %34 = vector.shape_cast %33 : vector<16xf32> to vector<16x1xf32>
    %35 = tpu.reciprocal %34 {approx = true} : vector<16x1xf32> -> vector<16x1xf32>
    %36 = vector.broadcast %35 : vector<16x1xf32> to vector<16x16xf32>
    %37 = arith.mulf %32, %36 : vector<16x16xf32>
    %38 = arith.truncf %37 : vector<16x16xf32> to vector<16x16xbf16>
    %cst_16 = arith.constant dense<0.000000e+00> : vector<16x32xf32>
    %39 = tpu.matmul %38, %9, %cst_16 {dimension_numbers = #tpu.dot_dimension_numbers<[1], [0], [0], [1], [0, 0, 1, 1], [], []>} : vector<16x16xbf16>, vector<16x32xbf16>, vector<16x32xf32> -> vector<16x32xf32>
    %40 = vector.broadcast %6 : vector<1x32xf32> to vector<16x32xf32>
    %41 = arith.addf %39, %40 : vector<16x32xf32>
    %cst_17 = arith.constant 0.000000e+00 : f32
    %42 = vector.broadcast %cst_17 : f32 to vector<16x32xf32>
    %43 = arith.maximumf %41, %42 : vector<16x32xf32>
    %44 = arith.truncf %43 : vector<16x32xf32> to vector<16x32xbf16>
    %c1 = arith.constant 1 : index
    %c0_18 = arith.constant 0 : index
    %c0_19 = arith.constant 0 : index
    %45 = vector.load %arg7[%c1, %c0_18, %c0_19] : memref<3x3x32xf32, #tpu.memory_space<vmem>>, vector<1x3x32xf32>
    %46 = vector.shape_cast %45 : vector<1x3x32xf32> to vector<3x32xf32>
    %47 = vector.extract_strided_slice %46 {offsets = [0, 0], sizes = [1, 32], strides = [1, 1]} : vector<3x32xf32> to vector<1x32xf32>
    %48 = vector.extract_strided_slice %46 {offsets = [1, 0], sizes = [1, 32], strides = [1, 1]} : vector<3x32xf32> to vector<1x32xf32>
    %49 = vector.extract_strided_slice %46 {offsets = [2, 0], sizes = [1, 32], strides = [1, 1]} : vector<3x32xf32> to vector<1x32xf32>
    %c0_20 = arith.constant 0 : index
    %c0_21 = arith.constant 0 : index
    %50 = vector.load %arg5[%c0_20, %c0_21] : memref<32x32xbf16, #tpu.memory_space<vmem>>, vector<32x32xbf16>
    %cst_22 = arith.constant dense<0.000000e+00> : vector<16x32xf32>
    %51 = tpu.matmul %44, %50, %cst_22 {dimension_numbers = #tpu.dot_dimension_numbers<[1], [0], [0], [1], [0, 0, 1, 1], [], []>} : vector<16x32xbf16>, vector<32x32xbf16>, vector<16x32xf32> -> vector<16x32xf32>
    %52 = arith.truncf %51 : vector<16x32xf32> to vector<16x32xbf16>
    %53 = vector.broadcast %48 : vector<1x32xf32> to vector<16x32xf32>
    %54 = arith.mulf %51, %53 : vector<16x32xf32>
    %cst_23 = arith.constant dense<0.000000e+00> : vector<16xf32>
    %55 = vector.multi_reduction <add>, %54, %cst_23 [1] : vector<16x32xf32> to vector<16xf32>
    %56 = vector.shape_cast %55 : vector<16xf32> to vector<16x1xf32>
    %57 = arith.truncf %47 : vector<1x32xf32> to vector<1x32xbf16>
    %cst_24 = arith.constant dense<0.000000e+00> : vector<1x16xf32>
    %58 = tpu.matmul %57, %52, %cst_24 {dimension_numbers = #tpu.dot_dimension_numbers<[1], [1], [0], [0], [0, 0, 1, 0], [], []>} : vector<1x32xbf16>, vector<16x32xbf16>, vector<1x16xf32> -> vector<1x16xf32>
    %59 = vector.broadcast %56 : vector<16x1xf32> to vector<16x16xf32>
    %60 = vector.broadcast %58 : vector<1x16xf32> to vector<16x16xf32>
    %61 = arith.addf %59, %60 : vector<16x16xf32>
    %cst_25 = arith.constant 0.000000e+00 : f32
    %62 = vector.broadcast %cst_25 : f32 to vector<16x16xf32>
    %63 = arith.cmpf ogt, %61, %62 : vector<16x16xf32>
    %cst_26 = arith.constant 2.000000e-01 : f32
    %64 = vector.broadcast %cst_26 : f32 to vector<16x16xf32>
    %65 = arith.mulf %64, %61 : vector<16x16xf32>
    %66 = arith.select %63, %61, %65 : vector<16x16xi1>, vector<16x16xf32>
    %cst_27 = arith.constant 0.000000e+00 : f32
    %67 = vector.broadcast %cst_27 : f32 to vector<16x16xf32>
    %68 = arith.cmpf ogt, %0, %67 : vector<16x16xf32>
    %cst_28 = arith.constant -1.000000e+30 : f32
    %69 = vector.broadcast %cst_28 : f32 to vector<16x16xf32>
    %70 = arith.select %68, %66, %69 : vector<16x16xi1>, vector<16x16xf32>
    %cst_29 = arith.constant dense<0xFF800000> : vector<16xf32>
    %71 = vector.multi_reduction <maximumf>, %70, %cst_29 [1] : vector<16x16xf32> to vector<16xf32>
    %72 = vector.shape_cast %71 : vector<16xf32> to vector<16x1xf32>
    %73 = vector.broadcast %72 : vector<16x1xf32> to vector<16x16xf32>
    %74 = arith.subf %70, %73 : vector<16x16xf32>
    %75 = math.exp %74 : vector<16x16xf32>
    %cst_30 = arith.constant dense<0.000000e+00> : vector<16xf32>
    %76 = vector.multi_reduction <add>, %75, %cst_30 [1] : vector<16x16xf32> to vector<16xf32>
    %77 = vector.shape_cast %76 : vector<16xf32> to vector<16x1xf32>
    %78 = tpu.reciprocal %77 {approx = true} : vector<16x1xf32> -> vector<16x1xf32>
    %79 = vector.broadcast %78 : vector<16x1xf32> to vector<16x16xf32>
    %80 = arith.mulf %75, %79 : vector<16x16xf32>
    %81 = arith.truncf %80 : vector<16x16xf32> to vector<16x16xbf16>
    %cst_31 = arith.constant dense<0.000000e+00> : vector<16x32xf32>
    %82 = tpu.matmul %81, %52, %cst_31 {dimension_numbers = #tpu.dot_dimension_numbers<[1], [0], [0], [1], [0, 0, 1, 1], [], []>} : vector<16x16xbf16>, vector<16x32xbf16>, vector<16x32xf32> -> vector<16x32xf32>
    %83 = vector.broadcast %49 : vector<1x32xf32> to vector<16x32xf32>
    %84 = arith.addf %82, %83 : vector<16x32xf32>
    %cst_32 = arith.constant 0.000000e+00 : f32
    %85 = vector.broadcast %cst_32 : f32 to vector<16x32xf32>
    %86 = arith.maximumf %84, %85 : vector<16x32xf32>
    %87 = arith.truncf %86 : vector<16x32xf32> to vector<16x32xbf16>
    %c2 = arith.constant 2 : index
    %c0_33 = arith.constant 0 : index
    %c0_34 = arith.constant 0 : index
    %88 = vector.load %arg7[%c2, %c0_33, %c0_34] : memref<3x3x32xf32, #tpu.memory_space<vmem>>, vector<1x3x32xf32>
    %89 = vector.shape_cast %88 : vector<1x3x32xf32> to vector<3x32xf32>
    %90 = vector.extract_strided_slice %89 {offsets = [0, 0], sizes = [1, 32], strides = [1, 1]} : vector<3x32xf32> to vector<1x32xf32>
    %91 = vector.extract_strided_slice %89 {offsets = [1, 0], sizes = [1, 32], strides = [1, 1]} : vector<3x32xf32> to vector<1x32xf32>
    %92 = vector.extract_strided_slice %89 {offsets = [2, 0], sizes = [1, 32], strides = [1, 1]} : vector<3x32xf32> to vector<1x32xf32>
    %c0_35 = arith.constant 0 : index
    %c0_36 = arith.constant 0 : index
    %93 = vector.load %arg6[%c0_35, %c0_36] : memref<32x32xbf16, #tpu.memory_space<vmem>>, vector<32x32xbf16>
    %cst_37 = arith.constant dense<0.000000e+00> : vector<16x32xf32>
    %94 = tpu.matmul %87, %93, %cst_37 {dimension_numbers = #tpu.dot_dimension_numbers<[1], [0], [0], [1], [0, 0, 1, 1], [], []>} : vector<16x32xbf16>, vector<32x32xbf16>, vector<16x32xf32> -> vector<16x32xf32>
    %95 = arith.truncf %94 : vector<16x32xf32> to vector<16x32xbf16>
    %96 = vector.broadcast %91 : vector<1x32xf32> to vector<16x32xf32>
    %97 = arith.mulf %94, %96 : vector<16x32xf32>
    %cst_38 = arith.constant dense<0.000000e+00> : vector<16xf32>
    %98 = vector.multi_reduction <add>, %97, %cst_38 [1] : vector<16x32xf32> to vector<16xf32>
    %99 = vector.shape_cast %98 : vector<16xf32> to vector<16x1xf32>
    %100 = arith.truncf %90 : vector<1x32xf32> to vector<1x32xbf16>
    %cst_39 = arith.constant dense<0.000000e+00> : vector<1x16xf32>
    %101 = tpu.matmul %100, %95, %cst_39 {dimension_numbers = #tpu.dot_dimension_numbers<[1], [1], [0], [0], [0, 0, 1, 0], [], []>} : vector<1x32xbf16>, vector<16x32xbf16>, vector<1x16xf32> -> vector<1x16xf32>
    %102 = vector.broadcast %99 : vector<16x1xf32> to vector<16x16xf32>
    %103 = vector.broadcast %101 : vector<1x16xf32> to vector<16x16xf32>
    %104 = arith.addf %102, %103 : vector<16x16xf32>
    %cst_40 = arith.constant 0.000000e+00 : f32
    %105 = vector.broadcast %cst_40 : f32 to vector<16x16xf32>
    %106 = arith.cmpf ogt, %104, %105 : vector<16x16xf32>
    %cst_41 = arith.constant 2.000000e-01 : f32
    %107 = vector.broadcast %cst_41 : f32 to vector<16x16xf32>
    %108 = arith.mulf %107, %104 : vector<16x16xf32>
    %109 = arith.select %106, %104, %108 : vector<16x16xi1>, vector<16x16xf32>
    %cst_42 = arith.constant 0.000000e+00 : f32
    %110 = vector.broadcast %cst_42 : f32 to vector<16x16xf32>
    %111 = arith.cmpf ogt, %0, %110 : vector<16x16xf32>
    %cst_43 = arith.constant -1.000000e+30 : f32
    %112 = vector.broadcast %cst_43 : f32 to vector<16x16xf32>
    %113 = arith.select %111, %109, %112 : vector<16x16xi1>, vector<16x16xf32>
    %cst_44 = arith.constant dense<0xFF800000> : vector<16xf32>
    %114 = vector.multi_reduction <maximumf>, %113, %cst_44 [1] : vector<16x16xf32> to vector<16xf32>
    %115 = vector.shape_cast %114 : vector<16xf32> to vector<16x1xf32>
    %116 = vector.broadcast %115 : vector<16x1xf32> to vector<16x16xf32>
    %117 = arith.subf %113, %116 : vector<16x16xf32>
    %118 = math.exp %117 : vector<16x16xf32>
    %cst_45 = arith.constant dense<0.000000e+00> : vector<16xf32>
    %119 = vector.multi_reduction <add>, %118, %cst_45 [1] : vector<16x16xf32> to vector<16xf32>
    %120 = vector.shape_cast %119 : vector<16xf32> to vector<16x1xf32>
    %121 = tpu.reciprocal %120 {approx = true} : vector<16x1xf32> -> vector<16x1xf32>
    %122 = vector.broadcast %121 : vector<16x1xf32> to vector<16x16xf32>
    %123 = arith.mulf %118, %122 : vector<16x16xf32>
    %124 = arith.truncf %123 : vector<16x16xf32> to vector<16x16xbf16>
    %cst_46 = arith.constant dense<0.000000e+00> : vector<16x32xf32>
    %125 = tpu.matmul %124, %95, %cst_46 {dimension_numbers = #tpu.dot_dimension_numbers<[1], [0], [0], [1], [0, 0, 1, 1], [], []>} : vector<16x16xbf16>, vector<16x32xbf16>, vector<16x32xf32> -> vector<16x32xf32>
    %126 = vector.broadcast %92 : vector<1x32xf32> to vector<16x32xf32>
    %127 = arith.addf %125, %126 : vector<16x32xf32>
    %cst_47 = arith.constant 0.000000e+00 : f32
    %128 = vector.broadcast %cst_47 : f32 to vector<16x32xf32>
    %129 = arith.maximumf %127, %128 : vector<16x32xf32>
    %130 = arith.truncf %129 : vector<16x32xf32> to vector<16x32xbf16>
    %c0_48 = arith.constant 0 : index
    %c0_49 = arith.constant 0 : index
    %131 = vector.load %arg10[%c0_48, %c0_49] : memref<2x64xf32, #tpu.memory_space<vmem>>, vector<2x64xf32>
    %132 = vector.extract_strided_slice %131 {offsets = [0, 0], sizes = [1, 64], strides = [1, 1]} : vector<2x64xf32> to vector<1x64xf32>
    %133 = vector.extract_strided_slice %131 {offsets = [1, 0], sizes = [1, 32], strides = [1, 1]} : vector<2x64xf32> to vector<1x32xf32>
    %c0_50 = arith.constant 0 : index
    %c0_51 = arith.constant 0 : index
    %134 = vector.load %arg2[%c0_50, %c0_51] : memref<8x64xbf16, #tpu.memory_space<vmem>>, vector<8x64xbf16>
    %c0_52 = arith.constant 0 : index
    %c0_53 = arith.constant 0 : index
    %135 = vector.load %arg8[%c0_52, %c0_53] : memref<64x64xbf16, #tpu.memory_space<vmem>>, vector<64x64xbf16>
    %cst_54 = arith.constant dense<0.000000e+00> : vector<8x64xf32>
    %136 = tpu.matmul %134, %135, %cst_54 {dimension_numbers = #tpu.dot_dimension_numbers<[1], [0], [0], [1], [0, 0, 1, 1], [], []>} : vector<8x64xbf16>, vector<64x64xbf16>, vector<8x64xf32> -> vector<8x64xf32>
    %137 = vector.broadcast %132 : vector<1x64xf32> to vector<8x64xf32>
    %138 = arith.addf %136, %137 : vector<8x64xf32>
    %cst_55 = arith.constant 0.000000e+00 : f32
    %139 = vector.broadcast %cst_55 : f32 to vector<8x64xf32>
    %140 = arith.maximumf %138, %139 : vector<8x64xf32>
    %141 = arith.truncf %140 : vector<8x64xf32> to vector<8x64xbf16>
    %c0_56 = arith.constant 0 : index
    %c0_57 = arith.constant 0 : index
    %142 = vector.load %arg9[%c0_56, %c0_57] : memref<64x32xbf16, #tpu.memory_space<vmem>>, vector<64x32xbf16>
    %cst_58 = arith.constant dense<0.000000e+00> : vector<8x32xf32>
    %143 = tpu.matmul %141, %142, %cst_58 {dimension_numbers = #tpu.dot_dimension_numbers<[1], [0], [0], [1], [0, 0, 1, 1], [], []>} : vector<8x64xbf16>, vector<64x32xbf16>, vector<8x32xf32> -> vector<8x32xf32>
    %144 = vector.broadcast %133 : vector<1x32xf32> to vector<8x32xf32>
    %145 = arith.addf %143, %144 : vector<8x32xf32>
    %146 = arith.truncf %145 : vector<8x32xf32> to vector<8x32xbf16>
    %c0_59 = arith.constant 0 : index
    %c0_60 = arith.constant 0 : index
    %c0_61 = arith.constant 0 : index
    %147 = vector.load %arg11[%c0_59, %c0_60, %c0_61] : memref<4x32x32xbf16, #tpu.memory_space<vmem>>, vector<1x32x32xbf16>
    %148 = vector.shape_cast %147 : vector<1x32x32xbf16> to vector<32x32xbf16>
    %cst_62 = arith.constant dense<0.000000e+00> : vector<16x32xf32>
    %149 = tpu.matmul %130, %148, %cst_62 {dimension_numbers = #tpu.dot_dimension_numbers<[1], [0], [0], [1], [0, 0, 1, 1], [], []>} : vector<16x32xbf16>, vector<32x32xbf16>, vector<16x32xf32> -> vector<16x32xf32>
    %c0_63 = arith.constant 0 : index
    %c0_64 = arith.constant 0 : index
    %150 = vector.load %arg12[%c0_63, %c0_64] : memref<4x32xf32, #tpu.memory_space<vmem>>, vector<1x32xf32>
    %151 = vector.broadcast %150 : vector<1x32xf32> to vector<16x32xf32>
    %152 = arith.addf %149, %151 : vector<16x32xf32>
    %c1_65 = arith.constant 1 : index
    %c0_66 = arith.constant 0 : index
    %c0_67 = arith.constant 0 : index
    %153 = vector.load %arg11[%c1_65, %c0_66, %c0_67] : memref<4x32x32xbf16, #tpu.memory_space<vmem>>, vector<1x32x32xbf16>
    %154 = vector.shape_cast %153 : vector<1x32x32xbf16> to vector<32x32xbf16>
    %cst_68 = arith.constant dense<0.000000e+00> : vector<16x32xf32>
    %155 = tpu.matmul %130, %154, %cst_68 {dimension_numbers = #tpu.dot_dimension_numbers<[1], [0], [0], [1], [0, 0, 1, 1], [], []>} : vector<16x32xbf16>, vector<32x32xbf16>, vector<16x32xf32> -> vector<16x32xf32>
    %c1_69 = arith.constant 1 : index
    %c0_70 = arith.constant 0 : index
    %156 = vector.load %arg12[%c1_69, %c0_70] : memref<4x32xf32, #tpu.memory_space<vmem>>, vector<1x32xf32>
    %157 = vector.broadcast %156 : vector<1x32xf32> to vector<16x32xf32>
    %158 = arith.addf %155, %157 : vector<16x32xf32>
    %c2_71 = arith.constant 2 : index
    %c0_72 = arith.constant 0 : index
    %c0_73 = arith.constant 0 : index
    %159 = vector.load %arg11[%c2_71, %c0_72, %c0_73] : memref<4x32x32xbf16, #tpu.memory_space<vmem>>, vector<1x32x32xbf16>
    %160 = vector.shape_cast %159 : vector<1x32x32xbf16> to vector<32x32xbf16>
    %cst_74 = arith.constant dense<0.000000e+00> : vector<16x32xf32>
    %161 = tpu.matmul %130, %160, %cst_74 {dimension_numbers = #tpu.dot_dimension_numbers<[1], [0], [0], [1], [0, 0, 1, 1], [], []>} : vector<16x32xbf16>, vector<32x32xbf16>, vector<16x32xf32> -> vector<16x32xf32>
    %c2_75 = arith.constant 2 : index
    %c0_76 = arith.constant 0 : index
    %162 = vector.load %arg12[%c2_75, %c0_76] : memref<4x32xf32, #tpu.memory_space<vmem>>, vector<1x32xf32>
    %163 = vector.broadcast %162 : vector<1x32xf32> to vector<16x32xf32>
    %164 = arith.addf %161, %163 : vector<16x32xf32>
    %165 = arith.truncf %152 : vector<16x32xf32> to vector<16x32xbf16>
    %166 = arith.truncf %158 : vector<16x32xf32> to vector<16x32xbf16>
    %cst_77 = arith.constant dense<0.000000e+00> : vector<16x16xf32>
    %167 = tpu.matmul %165, %166, %cst_77 {dimension_numbers = #tpu.dot_dimension_numbers<[1], [1], [0], [0], [0, 0, 1, 0], [], []>} : vector<16x32xbf16>, vector<16x32xbf16>, vector<16x16xf32> -> vector<16x16xf32>
    %cst_78 = arith.constant 0.176776692 : f32
    %168 = vector.broadcast %cst_78 : f32 to vector<16x16xf32>
    %169 = arith.mulf %167, %168 : vector<16x16xf32>
    %cst_79 = arith.constant dense<0xFF800000> : vector<16xf32>
    %170 = vector.multi_reduction <maximumf>, %169, %cst_79 [1] : vector<16x16xf32> to vector<16xf32>
    %171 = vector.shape_cast %170 : vector<16xf32> to vector<16x1xf32>
    %172 = vector.broadcast %171 : vector<16x1xf32> to vector<16x16xf32>
    %173 = arith.subf %169, %172 : vector<16x16xf32>
    %174 = math.exp %173 : vector<16x16xf32>
    %cst_80 = arith.constant dense<0.000000e+00> : vector<16xf32>
    %175 = vector.multi_reduction <add>, %174, %cst_80 [1] : vector<16x16xf32> to vector<16xf32>
    %176 = vector.shape_cast %175 : vector<16xf32> to vector<16x1xf32>
    %177 = tpu.reciprocal %176 {approx = true} : vector<16x1xf32> -> vector<16x1xf32>
    %178 = vector.broadcast %177 : vector<16x1xf32> to vector<16x16xf32>
    %179 = arith.mulf %174, %178 : vector<16x16xf32>
    %180 = arith.truncf %179 : vector<16x16xf32> to vector<16x16xbf16>
    %181 = arith.truncf %164 : vector<16x32xf32> to vector<16x32xbf16>
    %cst_81 = arith.constant dense<0.000000e+00> : vector<16x32xf32>
    %182 = tpu.matmul %180, %181, %cst_81 {dimension_numbers = #tpu.dot_dimension_numbers<[1], [0], [0], [1], [0, 0, 1, 1], [], []>} : vector<16x16xbf16>, vector<16x32xbf16>, vector<16x32xf32> -> vector<16x32xf32>
    %183 = arith.truncf %182 : vector<16x32xf32> to vector<16x32xbf16>
    %c3 = arith.constant 3 : index
    %c0_82 = arith.constant 0 : index
    %c0_83 = arith.constant 0 : index
    %184 = vector.load %arg11[%c3, %c0_82, %c0_83] : memref<4x32x32xbf16, #tpu.memory_space<vmem>>, vector<1x32x32xbf16>
    %185 = vector.shape_cast %184 : vector<1x32x32xbf16> to vector<32x32xbf16>
    %cst_84 = arith.constant dense<0.000000e+00> : vector<16x32xf32>
    %186 = tpu.matmul %183, %185, %cst_84 {dimension_numbers = #tpu.dot_dimension_numbers<[1], [0], [0], [1], [0, 0, 1, 1], [], []>} : vector<16x32xbf16>, vector<32x32xbf16>, vector<16x32xf32> -> vector<16x32xf32>
    %c3_85 = arith.constant 3 : index
    %c0_86 = arith.constant 0 : index
    %187 = vector.load %arg12[%c3_85, %c0_86] : memref<4x32xf32, #tpu.memory_space<vmem>>, vector<1x32xf32>
    %188 = vector.broadcast %187 : vector<1x32xf32> to vector<16x32xf32>
    %189 = arith.addf %186, %188 : vector<16x32xf32>
    %190 = arith.truncf %189 : vector<16x32xf32> to vector<16x32xbf16>
    %c0_87 = arith.constant 0 : index
    %c0_88 = arith.constant 0 : index
    %c0_89 = arith.constant 0 : index
    %191 = vector.load %arg13[%c0_87, %c0_88, %c0_89] : memref<4x32x32xbf16, #tpu.memory_space<vmem>>, vector<1x32x32xbf16>
    %192 = vector.shape_cast %191 : vector<1x32x32xbf16> to vector<32x32xbf16>
    %cst_90 = arith.constant dense<0.000000e+00> : vector<16x32xf32>
    %193 = tpu.matmul %190, %192, %cst_90 {dimension_numbers = #tpu.dot_dimension_numbers<[1], [0], [0], [1], [0, 0, 1, 1], [], []>} : vector<16x32xbf16>, vector<32x32xbf16>, vector<16x32xf32> -> vector<16x32xf32>
    %c0_91 = arith.constant 0 : index
    %c0_92 = arith.constant 0 : index
    %194 = vector.load %arg14[%c0_91, %c0_92] : memref<4x32xf32, #tpu.memory_space<vmem>>, vector<1x32xf32>
    %195 = vector.broadcast %194 : vector<1x32xf32> to vector<16x32xf32>
    %196 = arith.addf %193, %195 : vector<16x32xf32>
    %c1_93 = arith.constant 1 : index
    %c0_94 = arith.constant 0 : index
    %c0_95 = arith.constant 0 : index
    %197 = vector.load %arg13[%c1_93, %c0_94, %c0_95] : memref<4x32x32xbf16, #tpu.memory_space<vmem>>, vector<1x32x32xbf16>
    %198 = vector.shape_cast %197 : vector<1x32x32xbf16> to vector<32x32xbf16>
    %cst_96 = arith.constant dense<0.000000e+00> : vector<8x32xf32>
    %199 = tpu.matmul %146, %198, %cst_96 {dimension_numbers = #tpu.dot_dimension_numbers<[1], [0], [0], [1], [0, 0, 1, 1], [], []>} : vector<8x32xbf16>, vector<32x32xbf16>, vector<8x32xf32> -> vector<8x32xf32>
    %c1_97 = arith.constant 1 : index
    %c0_98 = arith.constant 0 : index
    %200 = vector.load %arg14[%c1_97, %c0_98] : memref<4x32xf32, #tpu.memory_space<vmem>>, vector<1x32xf32>
    %201 = vector.broadcast %200 : vector<1x32xf32> to vector<8x32xf32>
    %202 = arith.addf %199, %201 : vector<8x32xf32>
    %c2_99 = arith.constant 2 : index
    %c0_100 = arith.constant 0 : index
    %c0_101 = arith.constant 0 : index
    %203 = vector.load %arg13[%c2_99, %c0_100, %c0_101] : memref<4x32x32xbf16, #tpu.memory_space<vmem>>, vector<1x32x32xbf16>
    %204 = vector.shape_cast %203 : vector<1x32x32xbf16> to vector<32x32xbf16>
    %cst_102 = arith.constant dense<0.000000e+00> : vector<8x32xf32>
    %205 = tpu.matmul %146, %204, %cst_102 {dimension_numbers = #tpu.dot_dimension_numbers<[1], [0], [0], [1], [0, 0, 1, 1], [], []>} : vector<8x32xbf16>, vector<32x32xbf16>, vector<8x32xf32> -> vector<8x32xf32>
    %c2_103 = arith.constant 2 : index
    %c0_104 = arith.constant 0 : index
    %206 = vector.load %arg14[%c2_103, %c0_104] : memref<4x32xf32, #tpu.memory_space<vmem>>, vector<1x32xf32>
    %207 = vector.broadcast %206 : vector<1x32xf32> to vector<8x32xf32>
    %208 = arith.addf %205, %207 : vector<8x32xf32>
    %209 = arith.truncf %196 : vector<16x32xf32> to vector<16x32xbf16>
    %210 = arith.truncf %202 : vector<8x32xf32> to vector<8x32xbf16>
    %cst_105 = arith.constant dense<0.000000e+00> : vector<16x8xf32>
    %211 = tpu.matmul %209, %210, %cst_105 {dimension_numbers = #tpu.dot_dimension_numbers<[1], [1], [0], [0], [0, 0, 1, 0], [], []>} : vector<16x32xbf16>, vector<8x32xbf16>, vector<16x8xf32> -> vector<16x8xf32>
    %cst_106 = arith.constant 0.176776692 : f32
    %212 = vector.broadcast %cst_106 : f32 to vector<16x8xf32>
    %213 = arith.mulf %211, %212 : vector<16x8xf32>
    %cst_107 = arith.constant dense<0xFF800000> : vector<16xf32>
    %214 = vector.multi_reduction <maximumf>, %213, %cst_107 [1] : vector<16x8xf32> to vector<16xf32>
    %215 = vector.shape_cast %214 : vector<16xf32> to vector<16x1xf32>
    %216 = vector.broadcast %215 : vector<16x1xf32> to vector<16x8xf32>
    %217 = arith.subf %213, %216 : vector<16x8xf32>
    %218 = math.exp %217 : vector<16x8xf32>
    %cst_108 = arith.constant dense<0.000000e+00> : vector<16xf32>
    %219 = vector.multi_reduction <add>, %218, %cst_108 [1] : vector<16x8xf32> to vector<16xf32>
    %220 = vector.shape_cast %219 : vector<16xf32> to vector<16x1xf32>
    %221 = tpu.reciprocal %220 {approx = true} : vector<16x1xf32> -> vector<16x1xf32>
    %222 = vector.broadcast %221 : vector<16x1xf32> to vector<16x8xf32>
    %223 = arith.mulf %218, %222 : vector<16x8xf32>
    %224 = arith.truncf %223 : vector<16x8xf32> to vector<16x8xbf16>
    %225 = arith.truncf %208 : vector<8x32xf32> to vector<8x32xbf16>
    %cst_109 = arith.constant dense<0.000000e+00> : vector<16x32xf32>
    %226 = tpu.matmul %224, %225, %cst_109 {dimension_numbers = #tpu.dot_dimension_numbers<[1], [0], [0], [1], [0, 0, 1, 1], [], []>} : vector<16x8xbf16>, vector<8x32xbf16>, vector<16x32xf32> -> vector<16x32xf32>
    %227 = arith.truncf %226 : vector<16x32xf32> to vector<16x32xbf16>
    %c3_110 = arith.constant 3 : index
    %c0_111 = arith.constant 0 : index
    %c0_112 = arith.constant 0 : index
    %228 = vector.load %arg13[%c3_110, %c0_111, %c0_112] : memref<4x32x32xbf16, #tpu.memory_space<vmem>>, vector<1x32x32xbf16>
    %229 = vector.shape_cast %228 : vector<1x32x32xbf16> to vector<32x32xbf16>
    %cst_113 = arith.constant dense<0.000000e+00> : vector<16x32xf32>
    %230 = tpu.matmul %227, %229, %cst_113 {dimension_numbers = #tpu.dot_dimension_numbers<[1], [0], [0], [1], [0, 0, 1, 1], [], []>} : vector<16x32xbf16>, vector<32x32xbf16>, vector<16x32xf32> -> vector<16x32xf32>
    %c3_114 = arith.constant 3 : index
    %c0_115 = arith.constant 0 : index
    %231 = vector.load %arg14[%c3_114, %c0_115] : memref<4x32xf32, #tpu.memory_space<vmem>>, vector<1x32xf32>
    %232 = vector.broadcast %231 : vector<1x32xf32> to vector<16x32xf32>
    %233 = arith.addf %230, %232 : vector<16x32xf32>
    %234 = arith.truncf %233 : vector<16x32xf32> to vector<16x32xbf16>
    %c0_116 = arith.constant 0 : index
    %c0_117 = arith.constant 0 : index
    %235 = vector.load %arg3[%c0_116, %c0_117] : memref<2x16xbf16, #tpu.memory_space<vmem>>, vector<2x16xbf16>
    %cst_118 = arith.constant dense<0.000000e+00> : vector<2x32xf32>
    %236 = tpu.matmul %235, %234, %cst_118 {dimension_numbers = #tpu.dot_dimension_numbers<[1], [0], [0], [1], [0, 0, 1, 1], [], []>} : vector<2x16xbf16>, vector<16x32xbf16>, vector<2x32xf32> -> vector<2x32xf32>
    %c0_119 = arith.constant 0 : index
    %c0_120 = arith.constant 0 : index
    %237 = vector.load %arg15[%c0_119, %c0_120] : memref<2x32xf32, #tpu.memory_space<vmem>>, vector<2x32xf32>
    tpu.vector_store %arg15[%c0_119, %c0_120], %236 {strides = array<i32>} : memref<2x32xf32, #tpu.memory_space<vmem>>, vector<2x32xf32>,
    return
  }
}

</mosaic_0001>

<bundles_post_ra>
// kernel: tpu_custom_call.1
= control target key start
LH: loop header
LB: loop body
LE: loop exit
PB: predicated region body
PF: predicated region fallthrough
CT: control target
= control target key end

     0   :  { %20 = vsyncpa [#allocation3], 0  ;;  %s1887_s0 = inlined_call_operand.hbm [shape: bf16[16,16], index: 0, kind: input, shape index: {}]   ;;  %s1888_s1 = inlined_call_operand.vmem [shape: f32[16,16], index: 1, kind: input, shape index: {}]   ;;  %s1889_s2 = inlined_call_operand.vmem [shape: bf16[8,64], index: 2, kind: input, shape index: {}]   ;;  %s1890_s3 = inlined_call_operand.hbm [shape: bf16[2,16], index: 3, kind: input, shape index: {}]   ;;  %s1891_s4 = inlined_call_operand.hbm [shape: bf16[16,32], index: 4, kind: input, shape index: {}]   ;;  %s1892_s5 = inlined_call_operand.hbm [shape: bf16[32,32], index: 5, kind: input, shape index: {}]   ;;  %s1893_s6 = inlined_call_operand.hbm [shape: bf16[32,32], index: 6, kind: input, shape index: {}]   ;;  %s1894_s7 = inlined_call_operand.hbm [shape: f32[3,3,32], index: 7, kind: input, shape index: {}]   ;;  %s1895_s8 = inlined_call_operand.vmem [shape: bf16[64,64], index: 8, kind: input, shape index: {}]   ;;  %s1896_s9 = inlined_call_operand.vmem [shape: bf16[64,32], index: 9, kind: input, shape index: {}]   ;;  %s1897_s10 = inlined_call_operand.hbm [shape: f32[2,64], index: 10, kind: input, shape index: {}]   ;;  %s1898_s11 = inlined_call_operand.hbm [shape: bf16[4,32,32], index: 11, kind: input, shape index: {}]   ;;  %s1899_s12 = inlined_call_operand.vmem [shape: f32[4,32], index: 12, kind: input, shape index: {}]   ;;  %s1900_s13 = inlined_call_operand.hbm [shape: bf16[4,32,32], index: 13, kind: input, shape index: {}]   ;;  %s1901_s14 = inlined_call_operand.vmem [shape: f32[4,32], index: 14, kind: input, shape index: {}]   ;;  %s1902_s15 = inlined_call_operand.hbm [shape: f32[2,32], index: 15, kind: output, shape index: {}]  }
   0x1   :  { %21 = vsyncpa [#allocation6], 0 }
   0x2   :  { %22 = vsyncpa [#allocation9], 0 }
   0x3   :  { %23 = vsyncpa [#allocation12], 0 }
   0x4   :  { %24 = vsyncpa [#allocation15], 0  ;;  %s48_s20 = sshll.u32 %s1890_s3, 4  ;;  %s49_s20 = int_to_ptr.hbm [resolvable:$true] %s48_s20 }
   0x5   :  { %25 = vsyncpa [#allocation4], 0  ;;  %s1596_s21 = smov [#allocation5]   ;;  %s71_s25 = sshll.u32 %s1892_s5, 4  ;;  %s72_s25 = int_to_ptr.hbm [resolvable:$true] %s71_s25 }
   0x6   :  { %s50_s22 = sshll.u32 %s1596_s21, 4  ;;  %s1597_s26 = smov [#allocation8]   ;;  %s51_s22 = int_to_ptr.vmem [resolvable:$true] %s50_s22 }
   0x7   :  { %53 = dma.hbm_to_vmem [thread:$0]  %s49_s20, 16, %s51_s22, [#allocation6]  }
   0x8   :  { %s73_s27 = sshll.u32 %s1597_s26, 4  ;;  %s97_s30 = sshll.u32 %s1894_s7, 4  ;;  %s74_s27 = int_to_ptr.vmem [resolvable:$true] %s73_s27  ;;  %s98_s30 = int_to_ptr.hbm [resolvable:$true] %s97_s30 }
   0x9   :  { %s1598_s3 = smov 64   ;;  %s1599_s16 = smov 4  }
   0xa   :  { %79 = dma.hbm_to_vmem [thread:$0]  %s72_s25, 256, %s74_s27, [#allocation9], %s1598_s3, %s1598_s3, %s1599_s16  }
   0xb   :  { %s125_s19 = sshll.u32 %s1898_s11, 4  ;;  %s1600_s5 = smov [#allocation11]   ;;  %s126_s19 = int_to_ptr.hbm [resolvable:$true] %s125_s19 }
   0xc   :  { %s99_s20 = sshll.u32 %s1600_s5, 4  ;;  %s1601_s7 = smov [#allocation14]   ;;  %s100_s20 = int_to_ptr.vmem [resolvable:$true] %s99_s20 }
   0xd   :  { %105 = dma.hbm_to_vmem [thread:$0]  %s98_s30, 192, %s100_s20, [#allocation12], %s1598_s3, %s1598_s3, %s1599_s16  }
   0xe   :  { %s127_s21 = sshll.u32 %s1601_s7, 4  ;;  %s30_s24 = sshll.u32 %s1887_s0, 4  ;;  %s128_s21 = int_to_ptr.vmem [resolvable:$true] %s127_s21  ;;  %s31_s24 = int_to_ptr.hbm [resolvable:$true] %s30_s24 }
   0xf   :  { %133 = dma.hbm_to_vmem [thread:$0]  %s126_s19, 1024, %s128_s21, [#allocation15], %s1598_s3, %s1598_s3, %s1599_s16  }
  0x10   :  { %s58_s26 = sshll.u32 %s1891_s4, 4  ;;  %s1602_s27 = smov [#allocation2]   ;;  %s59_s26 = int_to_ptr.hbm [resolvable:$true] %s58_s26 }
  0x11   :  { %s32_s28 = sshll.u32 %s1602_s27, 4  ;;  %s1603_s29 = smov [#allocation7]   ;;  %s33_s28 = int_to_ptr.vmem [resolvable:$true] %s32_s28 }
  0x12   :  { %38 = dma.hbm_to_vmem [thread:$0]  %s31_s24, 128, %s33_s28, [#allocation3], %s1598_s3, %s1598_s3, %s1599_s16  }
  0x13   :  { %s60_s0 = sshll.u32 %s1603_s29, 4  ;;  %s84_s18 = sshll.u32 %s1893_s6, 4  ;;  %s61_s0 = int_to_ptr.vmem [resolvable:$true] %s60_s0  ;;  %s85_s18 = int_to_ptr.hbm [resolvable:$true] %s84_s18 }
  0x14   :  { %66 = dma.hbm_to_vmem [thread:$0]  %s59_s26, 128, %s61_s0, [#allocation6], %s1598_s3, %s1598_s3, %s1599_s16  }
  0x15   :  { %s115_s5 = sshll.u32 %s1897_s10, 4  ;;  %s1604_s20 = smov [#allocation10]   ;;  %s116_s5 = int_to_ptr.hbm [resolvable:$true] %s115_s5 }
  0x16   :  { %s86_s7 = sshll.u32 %s1604_s20, 4  ;;  %s1605_s21 = smov [#allocation13]   ;;  %s87_s7 = int_to_ptr.vmem [resolvable:$true] %s86_s7 }
  0x17   :  { %92 = dma.hbm_to_vmem [thread:$0]  %s85_s18, 256, %s87_s7, [#allocation9], %s1598_s3, %s1598_s3, %s1599_s16  }
  0x18   :  { %s117_s6 = sshll.u32 %s1605_s21, 4  ;;  %s140_s24 = sshll.u32 %s1900_s13, 4  ;;  %s118_s6 = int_to_ptr.vmem [resolvable:$true] %s117_s6  ;;  %s141_s24 = int_to_ptr.hbm [resolvable:$true] %s140_s24 }
  0x19   :  { %120 = dma.hbm_to_vmem [thread:$0]  %s116_s5, 32, %s118_s6, [#allocation12]  }
  0x1a   :  { %s1606_s11 = smov [#allocation16]  }
  0x1b   :  { %s142_s25 = sshll.u32 %s1606_s11, 4  ;;  %s143_s25 = int_to_ptr.vmem [resolvable:$true] %s142_s25 }
  0x1c   :  { %148 = dma.hbm_to_vmem [thread:$0]  %s141_s24, 1024, %s143_s25, [#allocation15], %s1598_s3, %s1598_s3, %s1599_s16  }
  0x1d   :  { %1584 = dma.done.wait [#allocation3], 128  }
  0x1e   :  { %1585 = vsyncadd [#allocation3], 4294967168 }
  0x1f   :  { %1586 = dma.done.wait [#allocation6], 144  }
  0x20   :  { %1587 = vsyncadd [#allocation6], 4294967152 }
  0x21   :  { %1588 = dma.done.wait [#allocation9], 512  }
  0x22   :  { %1589 = vsyncadd [#allocation9], 4294966784 }
  0x23   :  { %1590 = dma.done.wait [#allocation12], 224  }
  0x24   :  { %1591 = vsyncadd [#allocation12], 4294967072 }
  0x25   :  { %1592 = dma.done.wait [#allocation15], 2048  }
  0x26   :  { %1593 = vsyncadd [#allocation15], 4294965248  ;;  %v1255_v0 = vld [vmem:[#allocation7] sm:$0xff]  ;;  %v1254_v1 = vld [vmem:[#allocation2] sm:$0xff]  ;;  %vm206_vm0 = vcmask 130048   ;;  %vm228_vm1 = vcmask 261120  }
  0x27   :  { %217 = vmatpush.bf16.msra.mxu0 %v1255_v0  ;;  %v1737_v2 = vld [vmem:[#allocation11] sm:$0x7]  ;;  %v1749_v17 = vld [vmem:[%s1888_s1] sm:$0xff]  ;;  %v1757_v25 = vld [vmem:[%s1888_s1 + $0x8] sm:$0xff]  ;;  %vm587_vm10 = vcmask 523264   ;;  %vm1014_vm11 = vcmask 1043456  }
  0x28   :  { %v225_v3 = vperm.slane %v1737_v2, 1  ;;  %v235_v12 = vpack.c.bf16 %v1737_v2, %v1737_v2  ;;  %vm264_vm3 = vcmp.gt.f32.partialorder %v1749_v17, 0.0  ;;  %vm265_vm5 = vcmp.gt.f32.partialorder %v1757_v25, 0.0  ;;  %v1257_v47 = vld [vmem:[#allocation8 + $0x8] sm:$0xff]  ;;  %v1256_v48 = vld [vmem:[#allocation8] sm:$0xff]  ;;  %s1607_s0 = smov [#allocation17]  }
  0x29   :  { %339 = vmatpush.bf16.msra.mxu3 %v1257_v47  ;;  %v291_v50 = vperm.slane %v1737_v2, 2  ;;  %v1769_v57 = vld [vmem:[#allocation11 + $0x4] sm:$0x7]  ;;  %vm986_vm12 = vcmask 64512   ;;  %s1094_s30 = sshll.u32 %s1607_s0, 4  ;;  %s1096_s4 = sshll.u32 %s1902_s15, 4  ;;  %s1095_s30 = int_to_ptr.vmem [resolvable:$true] %s1094_s30  ;;  %s1097_s4 = int_to_ptr.hbm [resolvable:$true] %s1096_s4 }
  0x2a   :  { %1118 = vmatmul.msk.bf16.vlgmr.msra.gmra.mxu0 %vm206_vm0, %v1254_v1  ;;  %v348_v58 = vperm.slane %v1769_v57, 1  ;;  %vm1087_vm13 = vcmask 254976  }
  0x2d   :  { %340 = vmatpush.bf16.msra.mxu3 %v1256_v48  ;;  %v1789_v48 = vld [vmem:[#allocation11 + $0x8] sm:$0x7] }
  0xa7   :  { %v219_v4 = vpop.f32.mrf.mxu0 }
  0xa8   :  { %v226_v5 = vmul.f32 %v225_v3, %v219_v4 }
  0xaa   :  { %v229_v6 = vsel %vm228_vm1, %v226_v5, 0.0 }
  0xab   :  { %230 = vadd.xlane.f32.xlu0 %v229_v6 }
  0xaf   :  { %v221_v7 = vpop.f32.mrf.mxu0 }
  0xb0   :  { %v227_v8 = vmul.f32 %v225_v3, %v221_v7  ;;  %v224_v9 = vpack.c.bf16 %v221_v7, %v219_v4  ;;  %v357_v3 = vpack.c.bf16 %v1769_v57, %v1769_v57 }
  0xb2   :  { %302 = vmatpush.bf16.msra.mxu2 %v224_v9  ;;  %v232_v10 = vsel %vm228_vm1, %v227_v8, 0.0  ;;  %v240_v11 = vsel %vm228_vm1, %v224_v9, 0 }
  0xb3   :  { %233 = vadd.xlane.f32.xlu0 %v232_v10  ;;  %249 = vmatpush.bf16.xpose.msra.mxu1 %v240_v11 }
  0xba   :  { %1119 = vmatmul.msk.bf16.vlgmr.msra.gmra.mxu1 %vm228_vm1, %v235_v12 }
 0x11e   :  { %v231_v13 = vpop.xlane.xlu0 %230 }
 0x126   :  { %v234_v16 = vpop.xlane.xlu0 %233 }
 0x137   :  { %v251_v14 = vpop.f32.mrf.mxu1 }
 0x138   :  { %v255_v15 = vperm.slane %v251_v14, 0 }
 0x13a   :  { %v256_v18 = vadd.f32 %v255_v15, %v231_v13  ;;  %v257_v19 = vadd.f32 %v255_v15, %v234_v16 }
 0x13c   :  { %vm258_vm2 = vcmp.gt.f32.partialorder %v256_v18, 0.0  ;;  %v260_v20 = vmul.f32 0.2, %v256_v18  ;;  %v261_v22 = vmul.f32 0.2, %v257_v19  ;;  %vm259_vm4 = vcmp.gt.f32.partialorder %v257_v19, 0.0 }
 0x13e   :  { %v262_v21 = vsel %vm258_vm2, %v256_v18, %v260_v20  ;;  %v263_v27 = vsel %vm259_vm4, %v257_v19, %v261_v22 }
 0x13f   :  { %v253_v23 = vpop.f32.mrf.mxu1  ;;  %v266_v24 = vsel %vm264_vm3, %v262_v21, -1e+30  ;;  %v267_v28 = vsel %vm265_vm5, %v263_v27, -1e+30 }
 0x140   :  { %v268_v26 = vsel %vm206_vm0, %v266_v24, -inf  ;;  %v271_v29 = vsel %vm206_vm0, %v267_v28, -inf }
 0x141   :  { %269 = vmax.xlane.f32.xlu1 %v268_v26 }
 0x149   :  { %272 = vmax.xlane.f32.xlu1 %v271_v29 }
 0x1b4   :  { %v270_v30 = vpop.xlane.xlu1 %269 }
 0x1b5   :  { %v274_v31 = vsub.f32 %v266_v24, %v270_v30 }
 0x1b7   :  { %v276_v32 = vmul.f32 1.442695, %v274_v31 }
 0x1b9   :  { %1304 = vpow2.f32 %v276_v32 }
 0x1bc   :  { %v273_v33 = vpop.xlane.xlu1 %272 }
 0x1bd   :  { %v275_v34 = vsub.f32 %v267_v28, %v273_v33 }
 0x1bf   :  { %v1305_v35 = vpop.eup %1304  ;;  %v278_v36 = vmul.f32 1.442695, %v275_v34 }
 0x1c0   :  { %v280_v37 = vsel %vm206_vm0, %v1305_v35, 0.0 }
 0x1c1   :  { %1306 = vpow2.f32 %v278_v36  ;;  %281 = vadd.xlane.f32.xlu2 %v280_v37 }
 0x1c7   :  { %v1307_v38 = vpop.eup %1306 }
 0x1c8   :  { %v283_v39 = vsel %vm206_vm0, %v1307_v38, 0.0 }
 0x1c9   :  { %284 = vadd.xlane.f32.xlu2 %v283_v39  ;;  %v1258_v39 = vld [vmem:[#allocation10] sm:$0xff] }
 0x234   :  { %v282_v40 = vpop.xlane.xlu2 %281 }
 0x235   :  { %1308 = vrcp.f32 %v282_v40 }
 0x23b   :  { %v1309_v42 = vpop.eup %1308 }
 0x23c   :  { %v285_v41 = vpop.xlane.xlu2 %284  ;;  %v288_v44 = vmul.f32 %v1309_v42, %v1305_v35 }
 0x23d   :  { %1310 = vrcp.f32 %v285_v41  ;;  %v411_v41 = vperm.slane %v1769_v57, 2 }
 0x243   :  { %v1311_v43 = vpop.eup %1310 }
 0x244   :  { %v289_v45 = vmul.f32 %v1311_v43, %v1307_v38  ;;  %v1259_v38 = vld [vmem:[#allocation10 + $0x8] sm:$0xff] }
 0x245   :  { %459 = vmatpush.bf16.msrb.mxu1 %v1259_v38  ;;  %v1267_v38 = vld [vmem:[%s1896_s9 + $0x18] sm:$0xff] }
 0x246   :  { %v290_v46 = vpack.c.bf16 %v289_v45, %v288_v44 }
 0x248   :  { %1120 = vmatmul.msk.bf16.vlgmr.msra.gmra.mxu2 %vm206_vm0, %v290_v46 }
 0x249   :  { %460 = vmatpush.bf16.msrb.mxu1 %v1258_v39  ;;  %v552_v39 = vld [vmem:[#allocation13] sm:$0x3] }
 0x24d   :  { %646 = vmatpush.bf16.msra.mxu1 %v1267_v38 }
 0x2cb   :  { %v304_v49 = vpop.f32.mrf.mxu2 }
 0x2cc   :  { %v305_v51 = vadd.f32 %v304_v49, %v291_v50  ;;  %v468_v49 = vperm.slane %v1789_v48, 1 }
 0x2ce   :  { %v309_v54 = vmax.f32 %v305_v51, 0.0 }
 0x2d3   :  { %v306_v52 = vpop.f32.mrf.mxu2 }
 0x2d4   :  { %v307_v53 = vadd.f32 %v306_v52, %v291_v50 }
 0x2d6   :  { %v310_v55 = vmax.f32 %v307_v53, 0.0 }
 0x2d8   :  { %v311_v56 = vpack.c.bf16 %v310_v55, %v309_v54 }
 0x2da   :  { %1129 = vmatmul.msk.bf16.vlgmr.msra.gmra.mxu3 %vm228_vm1, %v311_v56 }
 0x35d   :  { %v342_v59 = vpop.f32.mrf.mxu3 }
 0x35e   :  { %v349_v60 = vmul.f32 %v348_v58, %v342_v59 }
 0x360   :  { %v351_v61 = vsel %vm228_vm1, %v349_v60, 0.0 }
 0x361   :  { %352 = vadd.xlane.f32.xlu0 %v351_v61 }
 0x365   :  { %v344_v62 = vpop.f32.mrf.mxu3 }
 0x366   :  { %v350_v63 = vmul.f32 %v348_v58, %v344_v62  ;;  %v347_v0 = vpack.c.bf16 %v344_v62, %v342_v59  ;;  %v477_v58 = vpack.c.bf16 %v1789_v48, %v1789_v48 }
 0x368   :  { %422 = vmatpush.bf16.msrb.mxu2 %v347_v0  ;;  %v354_v1 = vsel %vm228_vm1, %v350_v63, 0.0  ;;  %v362_v2 = vsel %vm228_vm1, %v347_v0, 0 }
 0x369   :  { %355 = vadd.xlane.f32.xlu1 %v354_v1  ;;  %371 = vmatpush.bf16.xpose.msrb.mxu0 %v362_v2 }
 0x370   :  { %1130 = vmatmul.msk.bf16.vlgmr.msrb.gmra.mxu0 %vm228_vm1, %v357_v3 }
 0x3d4   :  { %v353_v6 = vpop.xlane.xlu0 %352 }
 0x3dc   :  { %v356_v7 = vpop.xlane.xlu1 %355 }
 0x3ed   :  { %v373_v4 = vpop.f32.mrf.mxu0 }
 0x3ee   :  { %v377_v5 = vperm.slane %v373_v4, 0 }
 0x3f0   :  { %v378_v8 = vadd.f32 %v377_v5, %v353_v6  ;;  %v379_v9 = vadd.f32 %v377_v5, %v356_v7 }
 0x3f2   :  { %vm381_vm6 = vcmp.gt.f32.partialorder %v379_v9, 0.0  ;;  %v383_v10 = vmul.f32 0.2, %v379_v9  ;;  %vm380_vm7 = vcmp.gt.f32.partialorder %v378_v8, 0.0  ;;  %v382_v11 = vmul.f32 0.2, %v378_v8 }
 0x3f4   :  { %v385_v12 = vsel %vm381_vm6, %v379_v9, %v383_v10  ;;  %v384_v13 = vsel %vm380_vm7, %v378_v8, %v382_v11 }
 0x3f5   :  { %v375_v14 = vpop.f32.mrf.mxu0  ;;  %v387_v15 = vsel %vm265_vm5, %v385_v12, -1e+30  ;;  %v386_v16 = vsel %vm264_vm3, %v384_v13, -1e+30 }
 0x3f6   :  { %v391_v18 = vsel %vm206_vm0, %v387_v15, -inf  ;;  %v388_v19 = vsel %vm206_vm0, %v386_v16, -inf }
 0x3f7   :  { %392 = vmax.xlane.f32.xlu0 %v391_v18  ;;  %389 = vmax.xlane.f32.xlu2 %v388_v19  ;;  %v1263_v19 = vld [vmem:[%s1895_s8 + $0x18] sm:$0xff] }
 0x3f8   :  { %595 = vmatpush.bf16.msra.mxu2 %v1263_v19  ;;  %v1274_v19 = vld [vmem:[#allocation14 + $0x30] sm:$0xff] }
 0x46a   :  { %v393_v20 = vpop.xlane.xlu0 %392  ;;  %v390_v21 = vpop.xlane.xlu2 %389 }
 0x46b   :  { %v395_v22 = vsub.f32 %v387_v15, %v393_v20  ;;  %v394_v23 = vsub.f32 %v386_v16, %v390_v21  ;;  %v1262_v20 = vld [vmem:[%s1895_s8 + $0x10] sm:$0xff]  ;;  %v1261_v21 = vld [vmem:[%s1895_s8 + $0x8] sm:$0xff] }
 0x46c   :  { %596 = vmatpush.bf16.msra.mxu2 %v1262_v20 }
 0x46d   :  { %v398_v24 = vmul.f32 1.442695, %v395_v22  ;;  %v396_v26 = vmul.f32 1.442695, %v394_v23  ;;  %v1260_v22 = vld [vmem:[%s1895_s8] sm:$0xff] }
 0x46e   :  { %v553_v23 = vld [vmem:[%s1889_s2] sm:$0xf] }
 0x46f   :  { %1312 = vpow2.f32 %v398_v24 }
 0x470   :  { %1314 = vpow2.f32 %v396_v26  ;;  %597 = vmatpush.bf16.msra.mxu2 %v1261_v21 }
 0x474   :  { %598 = vmatpush.bf16.msra.mxu2 %v1260_v22 }
 0x475   :  { %v1313_v27 = vpop.eup %1312 }
 0x476   :  { %v1315_v28 = vpop.eup %1314  ;;  %v403_v29 = vsel %vm206_vm0, %v1313_v27, 0.0 }
 0x477   :  { %404 = vadd.xlane.f32.xlu2 %v403_v29  ;;  %v400_v30 = vsel %vm206_vm0, %v1315_v28, 0.0 }
 0x478   :  { %401 = vadd.xlane.f32.xlu1 %v400_v30 }
 0x4ea   :  { %v405_v31 = vpop.xlane.xlu2 %404 }
 0x4eb   :  { %v402_v32 = vpop.xlane.xlu1 %401  ;;  %1316 = vrcp.f32 %v405_v31 }
 0x4ec   :  { %1318 = vrcp.f32 %v402_v32  ;;  %v1269_v32 = vld [vmem:[#allocation14 + $0x8] sm:$0xff] }
 0x4f1   :  { %v1317_v33 = vpop.eup %1316 }
 0x4f2   :  { %v1319_v34 = vpop.eup %1318  ;;  %v409_v35 = vmul.f32 %v1317_v33, %v1313_v27  ;;  %v1271_v33 = vld [vmem:[#allocation14 + $0x18] sm:$0xff] }
 0x4f3   :  { %v408_v36 = vmul.f32 %v1319_v34, %v1315_v28  ;;  %v1273_v34 = vld [vmem:[#allocation14 + $0x28] sm:$0xff] }
 0x4f5   :  { %v410_v37 = vpack.c.bf16 %v409_v35, %v408_v36  ;;  %v1268_v35 = vld [vmem:[#allocation14] sm:$0xff]  ;;  %v1270_v36 = vld [vmem:[#allocation14 + $0x10] sm:$0xff] }
 0x4f7   :  { %1131 = vmatmul.msk.bf16.vlgmr.msrb.gmra.mxu2 %vm206_vm0, %v410_v37  ;;  %v1272_v37 = vld [vmem:[#allocation14 + $0x20] sm:$0xff] }
 0x4f8   :  { %749 = vmatpush.bf16.msrb.mxu2 %v1273_v34 }
 0x4fc   :  { %750 = vmatpush.bf16.msrb.mxu2 %v1272_v37 }
 0x507   :  { %1159 = vmatmul.msk.bf16.vlgmr.msra.gmra.mxu2 %vm587_vm10, %v553_v23 }
 0x57a   :  { %v424_v40 = vpop.f32.mrf.mxu2 }
 0x57b   :  { %v425_v42 = vadd.f32 %v424_v40, %v411_v41  ;;  %v1266_v40 = vld [vmem:[%s1896_s9 + $0x10] sm:$0xff] }
 0x57c   :  { %647 = vmatpush.bf16.msra.mxu1 %v1266_v40 }
 0x57d   :  { %v429_v45 = vmax.f32 %v425_v42, 0.0  ;;  %v1265_v42 = vld [vmem:[%s1896_s9 + $0x8] sm:$0xff] }
 0x580   :  { %648 = vmatpush.bf16.msra.mxu1 %v1265_v42 }
 0x582   :  { %v426_v43 = vpop.f32.mrf.mxu2 }
 0x583   :  { %v427_v44 = vadd.f32 %v426_v43, %v411_v41  ;;  %v562_v41 = vperm.slane %v552_v39, 0 }
 0x585   :  { %v430_v46 = vmax.f32 %v427_v44, 0.0 }
 0x587   :  { %v431_v47 = vpack.c.bf16 %v430_v46, %v429_v45  ;;  %v1264_v46 = vld [vmem:[%s1896_s9] sm:$0xff] }
 0x588   :  { %649 = vmatpush.bf16.msra.mxu1 %v1264_v46 }
 0x589   :  { %1140 = vmatmul.msk.bf16.vlgmr.msrb.gmra.mxu1 %vm228_vm1, %v431_v47 }
 0x58a   :  { %v600_v43 = vpop.f32.mrf.mxu2 }
 0x58b   :  { %v601_v44 = vadd.f32 %v600_v43, %v562_v41  ;;  %v1281_v43 = vld [vmem:[#allocation16 + $0x28] sm:$0xff] }
 0x58d   :  { %v604_v45 = vmax.f32 %v601_v44, 0.0  ;;  %v1280_v44 = vld [vmem:[#allocation16 + $0x20] sm:$0xff] }
 0x58f   :  { %v605_v47 = vpack.c.bf16 %v604_v45, %v604_v45 }
 0x599   :  { %1176 = vmatmul.msk.bf16.vlgmr.msra.gmra.mxu1 %vm587_vm10, %v605_v47 }
 0x606   :  { %v462_v50 = vpop.f32.mrf.mxu1 }
 0x607   :  { %v469_v51 = vmul.f32 %v468_v49, %v462_v50 }
 0x609   :  { %v471_v52 = vsel %vm228_vm1, %v469_v51, 0.0  ;;  %v531_v51 = vperm.slane %v1789_v48, 2 }
 0x60a   :  { %472 = vadd.xlane.f32.xlu0 %v471_v52 }
 0x60e   :  { %v464_v53 = vpop.f32.mrf.mxu1 }
 0x60f   :  { %v467_v54 = vpack.c.bf16 %v464_v53, %v462_v50  ;;  %v470_v55 = vmul.f32 %v468_v49, %v464_v53  ;;  %v602_v49 = vpop.f32.mrf.mxu2 }
 0x611   :  { %542 = vmatpush.bf16.msra.mxu0 %v467_v54  ;;  %v474_v56 = vsel %vm228_vm1, %v470_v55, 0.0  ;;  %v482_v57 = vsel %vm228_vm1, %v467_v54, 0 }
 0x612   :  { %475 = vadd.xlane.f32.xlu1 %v474_v56  ;;  %491 = vmatpush.bf16.xpose.msrb.mxu3 %v482_v57 }
 0x615   :  { %716 = vmatpush.bf16.msrb.mxu0 %v1271_v33 }
 0x619   :  { %1141 = vmatmul.msk.bf16.vlgmr.msrb.gmra.mxu3 %vm228_vm1, %v477_v58  ;;  %717 = vmatpush.bf16.msrb.mxu0 %v1270_v36  ;;  %v651_v58 = vpop.f32.mrf.mxu1 }
 0x61a   :  { %683 = vmatpush.bf16.msra.mxu3 %v1269_v32 }
 0x61e   :  { %684 = vmatpush.bf16.msra.mxu3 %v1268_v35 }
 0x67d   :  { %v473_v61 = vpop.xlane.xlu0 %472 }
 0x685   :  { %v476_v62 = vpop.xlane.xlu1 %475 }
 0x69c   :  { %v493_v59 = vpop.f32.mrf.mxu3 }
 0x69d   :  { %v497_v60 = vperm.slane %v493_v59, 0  ;;  %v653_v59 = vpop.f32.mrf.mxu1 }
 0x69f   :  { %v498_v63 = vadd.f32 %v497_v60, %v473_v61  ;;  %v499_v0 = vadd.f32 %v497_v60, %v476_v62  ;;  %v1296_v61 = vld [vmem:[%s1899_s12 + $0x1] ss:$0 sm:$0xff] }
 0x6a1   :  { %vm501_vm8 = vcmp.gt.f32.partialorder %v499_v0, 0.0  ;;  %v503_v1 = vmul.f32 0.2, %v499_v0  ;;  %vm500_vm9 = vcmp.gt.f32.partialorder %v498_v63, 0.0  ;;  %v502_v2 = vmul.f32 0.2, %v498_v63 }
 0x6a3   :  { %v505_v3 = vsel %vm501_vm8, %v499_v0, %v503_v1  ;;  %v504_v4 = vsel %vm500_vm9, %v498_v63, %v502_v2 }
 0x6a4   :  { %v495_v5 = vpop.f32.mrf.mxu3  ;;  %v507_v6 = vsel %vm265_vm5, %v505_v3, -1e+30  ;;  %v506_v7 = vsel %vm264_vm3, %v504_v4, -1e+30  ;;  %v1279_v3 = vld [vmem:[#allocation16 + $0x18] sm:$0xff] }
 0x6a5   :  { %v511_v8 = vsel %vm206_vm0, %v507_v6, -inf  ;;  %v508_v9 = vsel %vm206_vm0, %v506_v7, -inf  ;;  %v1298_v4 = vld [vmem:[%s1899_s12 + $0x2] ss:$0 sm:$0xff]  ;;  %v1297_v5 = vld [vmem:[%s1899_s12] ss:$0 sm:$0xff] }
 0x6a6   :  { %512 = vmax.xlane.f32.xlu0 %v511_v8  ;;  %509 = vmax.xlane.f32.xlu2 %v508_v9 }
 0x719   :  { %v513_v10 = vpop.xlane.xlu0 %512  ;;  %v510_v11 = vpop.xlane.xlu2 %509 }
 0x71a   :  { %v515_v12 = vsub.f32 %v507_v6, %v513_v10  ;;  %v514_v13 = vsub.f32 %v506_v7, %v510_v11  ;;  %v1278_v10 = vld [vmem:[#allocation16 + $0x10] sm:$0xff] }
 0x71c   :  { %v518_v14 = vmul.f32 1.442695, %v515_v12  ;;  %v516_v15 = vmul.f32 1.442695, %v514_v13 }
 0x71e   :  { %1320 = vpow2.f32 %v518_v14 }
 0x71f   :  { %1322 = vpow2.f32 %v516_v15 }
 0x724   :  { %v1321_v16 = vpop.eup %1320 }
 0x725   :  { %v1323_v25 = vpop.eup %1322  ;;  %v523_v18 = vsel %vm206_vm0, %v1321_v16, 0.0 }
 0x726   :  { %524 = vadd.xlane.f32.xlu2 %v523_v18  ;;  %v520_v17 = vsel %vm206_vm0, %v1323_v25, 0.0 }
 0x727   :  { %521 = vadd.xlane.f32.xlu1 %v520_v17  ;;  %v1275_v17 = vld [vmem:[#allocation14 + $0x38] sm:$0xff] }
 0x799   :  { %v525_v24 = vpop.xlane.xlu2 %524 }
 0x79a   :  { %v522_v26 = vpop.xlane.xlu1 %521  ;;  %1324 = vrcp.f32 %v525_v24 }
 0x79b   :  { %1326 = vrcp.f32 %v522_v26 }
 0x7a0   :  { %v1325_v27 = vpop.eup %1324 }
 0x7a1   :  { %v1327_v28 = vpop.eup %1326  ;;  %v529_v29 = vmul.f32 %v1325_v27, %v1321_v16  ;;  %v614_v16 = vperm.slane %v552_v39, 1  ;;  %v1299_v27 = vld [vmem:[%s1901_s14 + $0x1] ss:$0 sm:$0xff] }
 0x7a2   :  { %v528_v30 = vmul.f32 %v1327_v28, %v1323_v25 }
 0x7a3   :  { %v652_v25 = vadd.f32 %v651_v58, %v614_v16  ;;  %v1300_v58 = vld [vmem:[%s1901_s14 + $0x2] ss:$0 sm:$0xff] }
 0x7a4   :  { %v530_v31 = vpack.c.bf16 %v529_v29, %v528_v30 }
 0x7a5   :  { %v655_v18 = vpack.c.bf16 %v652_v25, %v652_v25 }
 0x7a6   :  { %1142 = vmatmul.msk.bf16.vlgmr.msra.gmra.mxu0 %vm206_vm0, %v530_v31 }
 0x7a7   :  { %851 = vmatpush.bf16.msra.mxu0 %v1275_v17 }
 0x7ab   :  { %852 = vmatpush.bf16.msra.mxu0 %v1274_v19 }
 0x823   :  { %v544_v50 = vpop.f32.mrf.mxu0 }
 0x824   :  { %v545_v52 = vadd.f32 %v544_v50, %v531_v51 }
 0x826   :  { %v549_v55 = vmax.f32 %v545_v52, 0.0 }
 0x82b   :  { %v546_v53 = vpop.f32.mrf.mxu0 }
 0x82c   :  { %v547_v54 = vadd.f32 %v546_v53, %v531_v51  ;;  %v1277_v53 = vld [vmem:[#allocation16 + $0x8] sm:$0xff] }
 0x82d   :  { %887 = vmatpush.bf16.msra.mxu2 %v1277_v53 }
 0x82e   :  { %v550_v56 = vmax.f32 %v547_v54, 0.0  ;;  %v1276_v54 = vld [vmem:[#allocation16] sm:$0xff] }
 0x830   :  { %v551_v57 = vpack.c.bf16 %v550_v56, %v549_v55 }
 0x831   :  { %888 = vmatpush.bf16.msra.mxu2 %v1276_v54 }
 0x832   :  { %1185 = vmatmul.msk.bf16.vlgmr.msra.gmra.mxu3 %vm228_vm1, %v551_v57  ;;  %1194 = vmatmul.msk.bf16.vlgmr.msrb.gmra.mxu0 %vm228_vm1, %v551_v57 }
 0x833   :  { %1203 = vmatmul.msk.bf16.vlgmr.msrb.gmra.mxu2 %vm228_vm1, %v551_v57 }
 0x8af   :  { %v719_v60 = vpop.f32.mrf.mxu0 }
 0x8b0   :  { %v720_v0 = vadd.f32 %v1296_v61, %v719_v60 }
 0x8b5   :  { %v686_v48 = vpop.f32.mrf.mxu3 }
 0x8b6   :  { %v752_v62 = vpop.f32.mrf.mxu2  ;;  %v687_v13 = vadd.f32 %v1297_v5, %v686_v48 }
 0x8b7   :  { %v721_v63 = vpop.f32.mrf.mxu0  ;;  %v753_v11 = vadd.f32 %v1298_v4, %v752_v62 }
 0x8b8   :  { %v722_v1 = vadd.f32 %v1296_v61, %v721_v63 }
 0x8ba   :  { %v758_v2 = vpack.c.bf16 %v722_v1, %v720_v0  ;;  %v1301_v0 = vld [vmem:[%s1899_s12 + $0x3] ss:$0 sm:$0xff] }
 0x8bc   :  { %v763_v6 = vsel %vm228_vm1, %v758_v2, 0 }
 0x8bd   :  { %v688_v7 = vpop.f32.mrf.mxu3  ;;  %772 = vmatpush.bf16.xpose.msrb.mxu1 %v763_v6  ;;  %v1302_v6 = vld [vmem:[%s1901_s14] ss:$0 sm:$0xff] }
 0x8be   :  { %v689_v8 = vadd.f32 %v1297_v5, %v688_v7  ;;  %v754_v9 = vpop.f32.mrf.mxu2 }
 0x8bf   :  { %v755_v12 = vadd.f32 %v1298_v4, %v754_v9 }
 0x8c0   :  { %v757_v15 = vpack.c.bf16 %v689_v8, %v687_v13 }
 0x8c1   :  { %v804_v14 = vpack.c.bf16 %v755_v12, %v753_v11 }
 0x8c3   :  { %815 = vmatpush.bf16.msrb.mxu3 %v804_v14 }
 0x8c4   :  { %1204 = vmatmul.msk.bf16.vlgmr.msrb.gmra.mxu1 %vm228_vm1, %v757_v15 }
 0x8c5   :  { %923 = vmatpush.bf16.msra.mxu1 %v1279_v3 }
 0x8c7   :  { %955 = vmatpush.bf16.msra.mxu3 %v1281_v43 }
 0x8c9   :  { %924 = vmatpush.bf16.msra.mxu1 %v1278_v10 }
 0x8cb   :  { %956 = vmatpush.bf16.msra.mxu3 %v1280_v44 }
 0x8d4   :  { %1232 = vmatmul.msk.bf16.vlgmr.msra.gmra.mxu1 %vm228_vm1, %v655_v18 }
 0x941   :  { %v774_v20 = vpop.f32.mrf.mxu1 }
 0x942   :  { %v779_v21 = vmul.f32 0.17677669, %v774_v20 }
 0x944   :  { %v781_v22 = vsel %vm206_vm0, %v779_v21, -inf }
 0x945   :  { %782 = vmax.xlane.f32.xlu0 %v781_v22 }
 0x949   :  { %v776_v23 = vpop.f32.mrf.mxu1 }
 0x94a   :  { %v780_v24 = vmul.f32 0.17677669, %v776_v23 }
 0x94c   :  { %v784_v26 = vsel %vm206_vm0, %v780_v24, -inf }
 0x94d   :  { %785 = vmax.xlane.f32.xlu1 %v784_v26 }
 0x951   :  { %v926_v28 = vpop.f32.mrf.mxu1 }
 0x952   :  { %v927_v29 = vadd.f32 %v1299_v27, %v926_v28 }
 0x954   :  { %v963_v30 = vpack.c.bf16 %v927_v29, %v927_v29 }
 0x956   :  { %v968_v31 = vsel %vm228_vm1, %v963_v30, 0 }
 0x957   :  { %977 = vmatpush.bf16.xpose.msrb.mxu0 %v968_v31 }
 0x959   :  { %v928_v32 = vpop.f32.mrf.mxu1 }
 0x9b8   :  { %v783_v33 = vpop.xlane.xlu0 %782 }
 0x9b9   :  { %v787_v34 = vsub.f32 %v779_v21, %v783_v33 }
 0x9bb   :  { %v789_v35 = vmul.f32 1.442695, %v787_v34  ;;  %v1283_v34 = vld [vmem:[#allocation16 + $0x38] sm:$0xff] }
 0x9bc   :  { %1061 = vmatpush.bf16.msrb.mxu1 %v1283_v34 }
 0x9bd   :  { %1328 = vpow2.f32 %v789_v35  ;;  %v1282_v35 = vld [vmem:[#allocation16 + $0x30] sm:$0xff] }
 0x9c0   :  { %v786_v36 = vpop.xlane.xlu1 %785  ;;  %1062 = vmatpush.bf16.msrb.mxu1 %v1282_v35 }
 0x9c1   :  { %v788_v37 = vsub.f32 %v780_v24, %v786_v36 }
 0x9c3   :  { %v1329_v38 = vpop.eup %1328  ;;  %v791_v39 = vmul.f32 1.442695, %v788_v37 }
 0x9c4   :  { %v793_v40 = vsel %vm206_vm0, %v1329_v38, 0.0 }
 0x9c5   :  { %1330 = vpow2.f32 %v791_v39  ;;  %794 = vadd.xlane.f32.xlu2 %v793_v40  ;;  %v1303_v40 = vld [vmem:[%s1901_s14 + $0x3] ss:$0 sm:$0xff] }
 0x9cb   :  { %v1331_v41 = vpop.eup %1330 }
 0x9cc   :  { %v796_v42 = vsel %vm206_vm0, %v1331_v41, 0.0 }
 0x9cd   :  { %797 = vadd.xlane.f32.xlu0 %v796_v42 }
 0xa38   :  { %v795_v45 = vpop.xlane.xlu2 %794 }
 0xa39   :  { %1332 = vrcp.f32 %v795_v45  ;;  %v1070_v45 = vld [vmem:[#allocation5] sm:$0x1] }
 0xa3f   :  { %v1333_v47 = vpop.eup %1332 }
 0xa40   :  { %v798_v46 = vpop.xlane.xlu0 %797  ;;  %v801_v50 = vmul.f32 %v1333_v47, %v1329_v38 }
 0xa41   :  { %1334 = vrcp.f32 %v798_v46 }
 0xa47   :  { %v1335_v49 = vpop.eup %1334 }
 0xa48   :  { %v802_v51 = vmul.f32 %v1335_v49, %v1331_v41 }
 0xa4a   :  { %v803_v52 = vpack.c.bf16 %v802_v51, %v801_v50 }
 0xa4c   :  { %1205 = vmatmul.msk.bf16.vlgmr.msrb.gmra.mxu3 %vm206_vm0, %v803_v52 }
 0xa5c   :  { %1241 = vmatmul.msk.bf16.vlgmr.msra.gmra.mxu3 %vm228_vm1, %v655_v18 }
 0xacf   :  { %v817_v55 = vpop.f32.mrf.mxu3 }
 0xad7   :  { %v819_v56 = vpop.f32.mrf.mxu3 }
 0xad8   :  { %v822_v57 = vpack.c.bf16 %v819_v56, %v817_v55 }
 0xada   :  { %1214 = vmatmul.msk.bf16.vlgmr.msra.gmra.mxu0 %vm228_vm1, %v822_v57 }
 0xadf   :  { %v958_v59 = vpop.f32.mrf.mxu3 }
 0xae0   :  { %v959_v60 = vadd.f32 %v1300_v58, %v958_v59 }
 0xae2   :  { %v1010_v61 = vpack.c.bf16 %v959_v60, %v959_v60 }
 0xae4   :  { %v1016_v48 = vsel %vm1014_vm11, %v1010_v61, 0 }
 0xae5   :  { %1025 = vmatpush.bf16.msrb.mxu2 %v1016_v48 }
 0xae7   :  { %v960_v62 = vpop.f32.mrf.mxu3 }
 0xb57   :  { %v854_v63 = vpop.f32.mrf.mxu0 }
 0xb58   :  { %v855_v2 = vadd.f32 %v1301_v0, %v854_v63 }
 0xb5f   :  { %v856_v1 = vpop.f32.mrf.mxu0 }
 0xb60   :  { %v857_v3 = vadd.f32 %v1301_v0, %v856_v1 }
 0xb62   :  { %v859_v4 = vpack.c.bf16 %v857_v3, %v855_v2 }
 0xb64   :  { %1223 = vmatmul.msk.bf16.vlgmr.msra.gmra.mxu2 %vm228_vm1, %v859_v4 }
 0xbe7   :  { %v890_v5 = vpop.f32.mrf.mxu2 }
 0xbe8   :  { %v891_v8 = vadd.f32 %v1302_v6, %v890_v5 }
 0xbef   :  { %v892_v7 = vpop.f32.mrf.mxu2 }
 0xbf0   :  { %v893_v9 = vadd.f32 %v1302_v6, %v892_v7 }
 0xbf2   :  { %v962_v10 = vpack.c.bf16 %v893_v9, %v891_v8 }
 0xbf4   :  { %1242 = vmatmul.msk.bf16.vlgmr.msrb.gmra.mxu0 %vm228_vm1, %v962_v10 }
 0xc71   :  { %v979_v11 = vpop.f32.mrf.mxu0 }
 0xc72   :  { %v984_v12 = vmul.f32 0.17677669, %v979_v11 }
 0xc74   :  { %v987_v13 = vsel %vm986_vm12, %v984_v12, -inf }
 0xc75   :  { %988 = vmax.xlane.f32.xlu1 %v987_v13 }
 0xc79   :  { %v981_v14 = vpop.f32.mrf.mxu0 }
 0xc7a   :  { %v985_v15 = vmul.f32 0.17677669, %v981_v14 }
 0xc7c   :  { %v990_v16 = vsel %vm986_vm12, %v985_v15, -inf }
 0xc7d   :  { %991 = vmax.xlane.f32.xlu2 %v990_v16 }
 0xce8   :  { %v989_v25 = vpop.xlane.xlu1 %988 }
 0xce9   :  { %v993_v18 = vsub.f32 %v984_v12, %v989_v25 }
 0xceb   :  { %v995_v17 = vmul.f32 1.442695, %v993_v18 }
 0xced   :  { %1336 = vpow2.f32 %v995_v17 }
 0xcf0   :  { %v992_v19 = vpop.xlane.xlu2 %991 }
 0xcf1   :  { %v994_v20 = vsub.f32 %v985_v15, %v992_v19 }
 0xcf3   :  { %v1337_v21 = vpop.eup %1336  ;;  %v997_v22 = vmul.f32 1.442695, %v994_v20 }
 0xcf4   :  { %v999_v23 = vsel %vm986_vm12, %v1337_v21, 0.0 }
 0xcf5   :  { %1338 = vpow2.f32 %v997_v22  ;;  %1000 = vadd.xlane.f32.xlu0 %v999_v23 }
 0xcfb   :  { %v1339_v24 = vpop.eup %1338 }
 0xcfc   :  { %v1002_v26 = vsel %vm986_vm12, %v1339_v24, 0.0 }
 0xcfd   :  { %1003 = vadd.xlane.f32.xlu1 %v1002_v26 }
 0xd68   :  { %v1001_v27 = vpop.xlane.xlu0 %1000 }
 0xd69   :  { %1340 = vrcp.f32 %v1001_v27 }
 0xd6f   :  { %v1341_v29 = vpop.eup %1340 }
 0xd70   :  { %v1004_v28 = vpop.xlane.xlu1 %1003  ;;  %v1007_v31 = vmul.f32 %v1341_v29, %v1337_v21 }
 0xd71   :  { %1342 = vrcp.f32 %v1004_v28 }
 0xd77   :  { %v1343_v30 = vpop.eup %1342 }
 0xd78   :  { %v1008_v32 = vmul.f32 %v1343_v30, %v1339_v24 }
 0xd7a   :  { %v1009_v33 = vpack.c.bf16 %v1008_v32, %v1007_v31 }
 0xd7c   :  { %1243 = vmatmul.msk.bf16.vlgmr.msrb.gmra.mxu2 %vm986_vm12, %v1009_v33 }
 0xdff   :  { %v1027_v36 = vpop.f32.mrf.mxu2 }
 0xe07   :  { %v1029_v37 = vpop.f32.mrf.mxu2 }
 0xe08   :  { %v1032_v38 = vpack.c.bf16 %v1029_v37, %v1027_v36 }
 0xe0a   :  { %1252 = vmatmul.msk.bf16.vlgmr.msrb.gmra.mxu1 %vm228_vm1, %v1032_v38 }
 0xe87   :  { %v1064_v39 = vpop.f32.mrf.mxu1 }
 0xe88   :  { %v1065_v42 = vadd.f32 %v1303_v40, %v1064_v39 }
 0xe8f   :  { %v1066_v41 = vpop.f32.mrf.mxu1 }
 0xe90   :  { %v1067_v43 = vadd.f32 %v1303_v40, %v1066_v41 }
 0xe92   :  { %v1069_v44 = vpack.c.bf16 %v1067_v43, %v1065_v42 }
 0xe94   :  { %1081 = vmatpush.bf16.msrb.mxu3 %v1069_v44 }
 0xe97   :  { %1253 = vmatmul.msk.bf16.vlgmr.msrb.gmra.mxu3 %vm206_vm0, %v1070_v45 }
 0xf1a   :  { %v1083_v46 = vpop.f32.mrf.mxu3 }
 0xf1b   :  { %1088 = vst.msk [vmem:[#allocation17] sm:$0x3] %vm1087_vm13, %v1083_v46 }
 0xf1c   :  { %1099 = dma.vmem_to_hbm [thread:$0]  %s1095_s30, 32, %s1097_s4, [#allocation4]  }
 0xf22   :  { %v1085_v47 = vpop.f32.mrf.mxu3 }
 0xf23   :  { %1594 = dma.done.wait [#allocation4], 32  }
 0xf24   :  { %1595 = vsyncadd [#allocation4], 4294967264 }
 0xf25   :  { %1104 = vsyncpa [#allocation3], 1 }
 0xf26   :  { %1105 = vsyncpa [#allocation6], 1 }
 0xf27   :  { %1106 = vsyncpa [#allocation9], 1 }
 0xf28   :  { %1107 = vsyncpa [#allocation12], 1 }
 0xf29   :  { %1108 = vsyncpa [#allocation15], 1 }
 0xf2a   :  { %1109 = vsyncpa [#allocation4], 1 }

</bundles_post_ra>
